<compile_context>
chip_gen: v7x
topology: tpu7x:2x2x1
jax: 0.10.0
libtpu: 0.0.40
codegen_flags: <defaults>
</compile_context>

<pallas_src>
import jax
import jax.numpy as jnp
from jax.experimental import pallas as pl
from jax.experimental.pallas import tpu as pltpu


def _round_up(x, m):
    return (x + m - 1) // m * m


def _backbone_update_kernel(s_ref, w_ref, b_ref, o_ref):
    # (TN, d) @ (d, 6) on the MXU with f32 accumulation; bias added in f32;
    # single cast at the store.
    acc = jnp.dot(s_ref[...], w_ref[...], preferred_element_type=jnp.float32)
    o_ref[...] = (acc + b_ref[...]).astype(o_ref.dtype)


def _choose_row_tile(n, d, in_itemsize, tile_rows, vmem_budget_bytes):
    """Pick an 8-aligned row tile that fits the per-step VMEM budget."""
    n8 = _round_up(n, 8)
    # Per-step VMEM ~ double-buffered input tile + double-buffered output tile
    # (weight/bias are tiny and resident; ignore them in the budget).
    per_row_bytes = 2 * d * in_itemsize + 2 * 6 * 4
    max_tn = max(8, (vmem_budget_bytes // per_row_bytes) // 8 * 8)
    tn = min(_round_up(max(tile_rows, 8), 8), max_tn, n8)
    return max(8, tn)


def backbone_update(s, weight, bias, *, tile_rows=2048,
                    min_rows_for_kernel=2048,
                    vmem_budget_bytes=12 * 1024 * 1024,
                    force_kernel=False):
    """BackboneUpdate forward: s @ weight.T + bias over the last dim.

    s: [..., d_single]; weight: [6, d_single] (PyTorch layout); bias: [6].
    """
    *lead, d = s.shape
    n = 1
    for x in lead:
        n *= x

    w_t = weight.T                                    # (d_single, 6)
    b_f32 = bias.astype(jnp.float32).reshape(1, 6)    # keep the bias add in f32

    # Tiny-N dispatch gate: let XLA fuse the small GEMV instead of paying
    # pallas_call launch overhead.
    if n < min_rows_for_kernel and not force_kernel:
        out = jnp.dot(s.reshape(n, d), w_t,
                      preferred_element_type=jnp.float32) + b_f32
        return out.astype(s.dtype).reshape(*lead, 6)

    s2d = s.reshape(n, d)
    in_itemsize = jnp.dtype(s.dtype).itemsize

    tn = _choose_row_tile(n, d, in_itemsize, tile_rows, vmem_budget_bytes)
    grid_steps = pl.cdiv(n, tn)

    # Megacore (v7x): don't let a large problem collapse into one grid step —
    # split into two parallel tiles so both TensorCores get work.  Harmless
    # (one extra ~sub-us step) on single-TC v5e/v6e.
    if grid_steps == 1 and n >= 1024:
        tn = max(8, _round_up(pl.cdiv(n, 2), 8))
        grid_steps = pl.cdiv(n, tn)

    w_bytes = jnp.dtype(weight.dtype).itemsize
    cost = pl.CostEstimate(
        flops=2 * n * d * 6,
        transcendentals=0,
        bytes_accessed=n * d * in_itemsize + d * 6 * w_bytes + n * 6 * in_itemsize,
    )

    out = pl.pallas_call(
        _backbone_update_kernel,
        out_shape=jax.ShapeDtypeStruct((n, 6), s.dtype),
        grid=(grid_steps,),
        in_specs=[
            pl.BlockSpec((tn, d), lambda i: (i, 0)),   # streamed activation tiles
            pl.BlockSpec((d, 6), lambda i: (0, 0)),    # resident weight
            pl.BlockSpec((1, 6), lambda i: (0, 0)),    # resident bias (f32)
        ],
        out_specs=pl.BlockSpec((tn, 6), lambda i: (i, 0)),
        compiler_params=pltpu.CompilerParams(
            dimension_semantics=("parallel",)),
        cost_estimate=cost,
    )(s2d, w_t, b_f32)

    return out.reshape(*lead, 6)


if __name__ == "__main__":
    key = jax.random.PRNGKey(0)
    k_s, k_w, k_b, k_s2 = jax.random.split(key, 4)

    # Small shape consistent with the structure module; force the kernel path.
    batch, seq, d_single = 2, 8, 32
    s = jax.random.normal(k_s, (batch, seq, d_single), dtype=jnp.float32)
    # NOTE: init='final' in Uni-Fold zero-initializes the linear; use small
    # random weights so the matmul path is actually exercised.
    weight = 0.02 * jax.random.normal(k_w, (6, d_single), dtype=jnp.float32)
    bias = 0.01 * jax.random.normal(k_b, (6,), dtype=jnp.float32)

    out = backbone_update(s, weight, bias, force_kernel=True)
    out = jax.block_until_ready(out)
    ref = s @ weight.T + bias
    assert out.shape == (batch, seq, 6)
    assert jnp.allclose(out, ref, atol=2e-4, rtol=2e-3)

    # Larger, non-tile-aligned shape: exercises the multi-step parallel grid
    # and the ragged (masked-write) last block with NO wrapper-side padding.
    batch2, seq2, d2 = 2, 700, 128
    s2 = jax.random.normal(k_s2, (batch2, seq2, d2), dtype=jnp.float32)
    w2 = 0.02 * jax.random.normal(k_w, (6, d2), dtype=jnp.float32)
    out2 = backbone_update(s2, w2, bias, force_kernel=True)
    out2 = jax.block_until_ready(out2)
    ref2 = s2 @ w2.T + bias
    assert out2.shape == (batch2, seq2, 6)
    assert jnp.allclose(out2, ref2, atol=2e-4, rtol=2e-3)

    # bf16 activations/weights (the documented dtype lever for v6e/v7x):
    # f32 accumulation + f32 bias, single cast at the store.
    s3 = s2.astype(jnp.bfloat16)
    w3 = w2.astype(jnp.bfloat16)
    out3 = backbone_update(s3, w3, bias, force_kernel=True)
    out3 = jax.block_until_ready(out3)
    ref3 = (s3.astype(jnp.float32) @ w3.astype(jnp.float32).T + bias).astype(jnp.bfloat16)
    assert out3.shape == (batch2, seq2, 6)
    assert jnp.allclose(out3.astype(jnp.float32), ref3.astype(jnp.float32),
                        atol=2e-2, rtol=2e-2)

    print("KERNEL_OK")
</pallas_src>

<mosaic_0001>
module attributes {stable_mosaic.version = 11 : i64} {
  func.func @_backbone_update_kernel(%arg0: i32, %arg1: memref<16x32xf32, #tpu.memory_space<vmem>>, %arg2: memref<32x6xf32, #tpu.memory_space<vmem>>, %arg3: memref<1x6xf32, #tpu.memory_space<vmem>>, %arg4: memref<16x6xf32, #tpu.memory_space<vmem>>) attributes {dimension_semantics = [#tpu.dimension_semantics<parallel>], iteration_bounds = array<i64: 1>, scalar_prefetch = 0 : i64, scratch_operands = 0 : i64, tpu.core_type = #tpu.core_type<tc>, window_params = [{transform_indices = @transform_0, window_bounds = array<i64: 16, 32>}, {pipeline_mode = #tpu.pipeline_mode<synchronous>, transform_indices = @transform_1, window_bounds = array<i64: 32, 6>}, {pipeline_mode = #tpu.pipeline_mode<synchronous>, transform_indices = @transform_2, window_bounds = array<i64: 1, 6>}, {transform_indices = @transform_3, window_bounds = array<i64: 16, 6>}]} {
    %c0 = arith.constant 0 : index
    %c0_0 = arith.constant 0 : index
    %0 = vector.load %arg1[%c0, %c0_0] : memref<16x32xf32, #tpu.memory_space<vmem>>, vector<16x32xf32>
    %c0_1 = arith.constant 0 : index
    %c0_2 = arith.constant 0 : index
    %1 = vector.load %arg2[%c0_1, %c0_2] : memref<32x6xf32, #tpu.memory_space<vmem>>, vector<32x6xf32>
    %cst = arith.constant dense<0.000000e+00> : vector<16x6xf32>
    %2 = tpu.matmul %0, %1, %cst {dimension_numbers = #tpu.dot_dimension_numbers<[1], [0], [0], [1], [0, 0, 1, 1], [], []>} : vector<16x32xf32>, vector<32x6xf32>, vector<16x6xf32> -> vector<16x6xf32>
    %c0_3 = arith.constant 0 : index
    %c0_4 = arith.constant 0 : index
    %3 = vector.load %arg3[%c0_3, %c0_4] : memref<1x6xf32, #tpu.memory_space<vmem>>, vector<1x6xf32>
    %4 = vector.broadcast %3 : vector<1x6xf32> to vector<16x6xf32>
    %5 = arith.addf %2, %4 : vector<16x6xf32>
    %c0_5 = arith.constant 0 : index
    %c0_6 = arith.constant 0 : index
    %6 = vector.load %arg4[%c0_5, %c0_6] : memref<16x6xf32, #tpu.memory_space<vmem>>, vector<16x6xf32>
    tpu.vector_store %arg4[%c0_5, %c0_6], %5 {strides = array<i32>} : memref<16x6xf32, #tpu.memory_space<vmem>>, vector<16x6xf32>,
    return
  }
  func.func @transform_0(%arg0: i32) -> (i32, i32) {
    %c0_i32 = arith.constant 0 : i32
    %c0_i32_0 = arith.constant 0 : i32
    return %arg0, %c0_i32 : i32, i32
  }
  func.func @transform_1(%arg0: i32) -> (i32, i32) {
    %c0_i32 = arith.constant 0 : i32
    %c0_i32_0 = arith.constant 0 : i32
    %c0_i32_1 = arith.constant 0 : i32
    return %c0_i32, %c0_i32_0 : i32, i32
  }
  func.func @transform_2(%arg0: i32) -> (i32, i32) {
    %c0_i32 = arith.constant 0 : i32
    %c0_i32_0 = arith.constant 0 : i32
    %c0_i32_1 = arith.constant 0 : i32
    return %c0_i32, %c0_i32_0 : i32, i32
  }
  func.func @transform_3(%arg0: i32) -> (i32, i32) {
    %c0_i32 = arith.constant 0 : i32
    %c0_i32_0 = arith.constant 0 : i32
    return %arg0, %c0_i32 : i32, i32
  }
}

</mosaic_0001>

<bundles_post_ra>
// kernel: tpu_custom_call.1
= control target key start
LH: loop header
LB: loop body
LE: loop exit
PB: predicated region body
PF: predicated region fallthrough
CT: control target
= control target key end

     0   :  { %vm27_vm0 = vcmask 261120   ;;  %vm109_vm1 = vcmask 48128   ;;  %s191_s1 = inlined_call_operand.vmem [shape: f32[32,6], index: 1, kind: input, shape index: {}]   ;;  %s192_s0 = inlined_call_operand.vmem [shape: f32[16,32], index: 0, kind: input, shape index: {}]   ;;  %s193_s2 = inlined_call_operand.vmem [shape: f32[1,6], index: 2, kind: input, shape index: {}]   ;;  %s194_s3 = inlined_call_operand.vmem [shape: f32[16,6], index: 3, kind: output, shape index: {}]  }
   0x1   :  { %v16_v0 = vld [vmem:[%s191_s1] sm:$0xff]  ;;  %v17_v1 = vld [vmem:[%s191_s1 + $0x8] sm:$0xff]  ;;  %v18_v2 = vld [vmem:[%s191_s1 + $0x10] sm:$0xff] }
   0x2   :  { %v136_v3 = vpack.c.bf16 %v17_v1, %v16_v0  ;;  %v19_v4 = vld [vmem:[%s191_s1 + $0x18] sm:$0xff]  ;;  %v14_v5 = vld [vmem:[%s192_s0] sm:$0xff]  ;;  %v15_v7 = vld [vmem:[%s192_s0 + $0x8] sm:$0xff] }
   0x3   :  { %v140_v6 = vpack.c.bf16 %v19_v4, %v18_v2  ;;  %133 = vmatprep.mubr.msk.f32.mxu0 %vm27_vm0, %v14_v5  ;;  %v116_v8 = vld [vmem:[%s193_s2] ss:$0 sm:$0xff] }
   0x4   :  { %137 = vmatprep.subr.bf16.mxu0 %v136_v3 }
   0x5   :  { %139 = vmatpush3.bf16.msra.mxu0 %v136_v3 }
   0x6   :  { %141 = vmatprep.subr.bf16.mxu0 %v140_v6 }
   0x9   :  { %143 = vmatpush3.bf16.msra.mxu0 %v140_v6 }
   0xc   :  { %134 = vmatmul.mubr.msk.f32.vlgmr.msra.gmra.mrb[0].mxu0 %vm27_vm0, %v15_v7 }
  0xdf   :  { %v135_v9 = vpop.f32.mrb[0].mxu0 }
  0xe0   :  { %v106_v10 = vadd.f32 %v135_v9, %v116_v8  ;;  %v100_v11 = vpop.f32.mrb[1].mxu0 }
  0xe1   :  { %v101_v12 = vadd.f32 %v116_v8, %v100_v11 }
  0xe2   :  { %111 = vst.msk [vmem:[%s194_s3 + $0x8] sm:$0xff] %vm109_vm1, %v106_v10 }
  0xe3   :  { %110 = vst.msk [vmem:[%s194_s3] sm:$0xff] %vm109_vm1, %v101_v12 }

</bundles_post_ra>
